<compile_context>
chip_gen: v5e
topology: v5e:2x2
jax: 0.10.0
libtpu: 0.0.40
codegen_flags: <defaults>
</compile_context>

<pallas_src>
import jax
import jax.numpy as jnp
from jax.experimental import pallas as pl
from jax.experimental.pallas import tpu as pltpu


def _round_up(x, m):
    return ((x + m - 1) // m) * m


def critic_kernel(s_ref, a_ref, w1s_ref, w1a_ref, b1_ref, w2_ref, b2_ref,
                  wq_ref, bq_ref, o_ref):
    # s_ref : (bm, Ds)    a_ref : (bm, Da)
    # w1s_ref: (Ds, F1)   w1a_ref: (Da, F1)   b1_ref: (1, F1)
    # w2_ref : (F1, F2)   b2_ref : (1, F2)
    # wq_ref : (1, F2)    bq_ref : (1,) scalar in SMEM
    # o_ref  : (bm, 1)

    # fc1 on the split inputs (equivalent to cat([state, action]) @ W1).
    h1 = jnp.dot(s_ref[...], w1s_ref[...], preferred_element_type=jnp.float32)
    h1 = h1 + jnp.dot(a_ref[...], w1a_ref[...], preferred_element_type=jnp.float32)
    h1 = jnp.maximum(h1 + b1_ref[...], 0.0)

    # fc2
    h2 = jnp.dot(h1, w2_ref[...], preferred_element_type=jnp.float32)
    h2 = jnp.maximum(h2 + b2_ref[...], 0.0)

    # q head: (F2 -> 1) as a VPU multiply + cross-lane (XLU) reduce; keeps the
    # MXU free and avoids an N=1 systolic pass.  keepdims keeps everything 2-D.
    q = jnp.sum(h2 * wq_ref[...], axis=-1, keepdims=True) + bq_ref[0]   # (bm, 1)
    o_ref[...] = q.astype(o_ref.dtype)


def critic_forward(state, action, params, *, bm=None):
    """Pallas implementation of CriticNetwork.forward.

    state : (B, input_dim)  f32
    action: (B, action_dim) f32
    params: (w1_state, w1_action, b1, w2, b2, wq_row, bq)
    returns q: (B, 1) f32
    """
    w1s, w1a, b1, w2, b2, wq_row, bq = params
    B, Ds = state.shape
    Da = action.shape[1]
    F1 = w1s.shape[1]
    F2 = w2.shape[1]

    # Batch tile: default 256, never larger than the (8-aligned) padded batch,
    # always a multiple of 8 (sublane constraint on the second-minor dim).
    if bm is None:
        bm = 256
    bm = max(8, min(bm, _round_up(B, 8)))
    bm = _round_up(bm, 8)
    B_pad = _round_up(B, bm)

    if B_pad != B:
        pad = B_pad - B
        state = jnp.pad(state, ((0, pad), (0, 0)))
        action = jnp.pad(action, ((0, pad), (0, 0)))

    n_tiles = B_pad // bm
    D = Ds + Da
    flops = 2 * B_pad * (D * F1 + F1 * F2 + F2)
    bytes_accessed = 4 * (
        B_pad * D                       # inputs
        + D * F1 + F1 + F1 * F2 + F2    # weights + biases
        + F2 + 1                        # q head
        + B_pad                         # output
    )

    out = pl.pallas_call(
        critic_kernel,
        out_shape=jax.ShapeDtypeStruct((B_pad, 1), jnp.float32),
        grid_spec=pltpu.PrefetchScalarGridSpec(
            num_scalar_prefetch=0,
            grid=(n_tiles,),
            in_specs=[
                pl.BlockSpec((bm, Ds), lambda i: (i, 0)),   # state tile
                pl.BlockSpec((bm, Da), lambda i: (i, 0)),   # action tile
                pl.BlockSpec((Ds, F1), lambda i: (0, 0)),   # w1_state (resident)
                pl.BlockSpec((Da, F1), lambda i: (0, 0)),   # w1_action (resident)
                pl.BlockSpec((1, F1), lambda i: (0, 0)),    # b1
                pl.BlockSpec((F1, F2), lambda i: (0, 0)),   # w2 (resident)
                pl.BlockSpec((1, F2), lambda i: (0, 0)),    # b2
                pl.BlockSpec((1, F2), lambda i: (0, 0)),    # wq row
                pl.BlockSpec(memory_space=pltpu.MemorySpace.SMEM),  # bq scalar
            ],
            out_specs=pl.BlockSpec((bm, 1), lambda i: (i, 0)),
        ),
        compiler_params=pltpu.CompilerParams(
            dimension_semantics=("parallel",),   # batch tiles shard across TCs (v7x)
        ),
        cost_estimate=pl.CostEstimate(
            flops=flops, transcendentals=0, bytes_accessed=bytes_accessed),
    )(state, action, w1s, w1a, b1, w2, b2, wq_row, bq)

    return out[:B]


def init_params(key, input_dim, action_dim, fc1_dims=256, fc2_dims=256):
    """Deterministic init mimicking nn.Linear's U(-1/sqrt(fan_in), 1/sqrt(fan_in)).

    Weights are stored as [in_features, out_features]; fc1 is pre-split into a
    state part and an action part; the q head is a (1, F2) row + scalar bias.
    """
    d_in = input_dim + action_dim
    k = jax.random.split(key, 6)

    def uniform(k_, shape, fan_in):
        bound = 1.0 / jnp.sqrt(jnp.float32(fan_in))
        return jax.random.uniform(k_, shape, jnp.float32, -bound, bound)

    w1 = uniform(k[0], (d_in, fc1_dims), d_in)
    w1s, w1a = w1[:input_dim], w1[input_dim:]
    b1 = uniform(k[1], (1, fc1_dims), d_in)
    w2 = uniform(k[2], (fc1_dims, fc2_dims), fc1_dims)
    b2 = uniform(k[3], (1, fc2_dims), fc1_dims)
    wq_row = uniform(k[4], (1, fc2_dims), fc2_dims)   # final layer weights as row
    bq = uniform(k[5], (1,), fc2_dims)                # scalar bias (SMEM)
    return (w1s, w1a, b1, w2, b2, wq_row, bq)


def critic_ref(state, action, params):
    """Pure-JAX reference matching the PyTorch forward (concat form)."""
    w1s, w1a, b1, w2, b2, wq_row, bq = params
    hi = jax.lax.Precision.HIGHEST
    x = jnp.concatenate([state, action], axis=1)
    w1 = jnp.concatenate([w1s, w1a], axis=0)
    h1 = jnp.maximum(jnp.dot(x, w1, precision=hi) + b1, 0.0)
    h2 = jnp.maximum(jnp.dot(h1, w2, precision=hi) + b2, 0.0)
    return jnp.dot(h2, wq_row.T, precision=hi) + bq


if __name__ == "__main__":
    key = jax.random.PRNGKey(0)
    k_params, k_state, k_action = jax.random.split(key, 3)

    batch = 8
    input_dim = 8      # input_dims = (8,)
    action_dim = 4     # action_dims = 4

    params = init_params(k_params, input_dim, action_dim, 256, 256)
    state = jax.random.normal(k_state, (batch, input_dim), jnp.float32)
    action = jax.random.normal(k_action, (batch, action_dim), jnp.float32)

    # Small batch: single grid step, whole (8-row) batch in one tile.
    q = jax.block_until_ready(critic_forward(state, action, params))
    q_ref = critic_ref(state, action, params)
    assert q.shape == (batch, 1)
    assert jnp.allclose(q, q_ref, atol=1e-3, rtol=1e-3), "mismatch vs reference"

    # Non-multiple batch: exercises padding + multi-tile grid.
    batch2 = 300
    s2 = jax.random.normal(jax.random.PRNGKey(1), (batch2, input_dim), jnp.float32)
    a2 = jax.random.normal(jax.random.PRNGKey(2), (batch2, action_dim), jnp.float32)
    q2 = jax.block_until_ready(critic_forward(s2, a2, params, bm=128))
    q2_ref = critic_ref(s2, a2, params)
    assert q2.shape == (batch2, 1)
    assert jnp.allclose(q2, q2_ref, atol=1e-3, rtol=1e-3), "mismatch vs reference (padded)"

    print("KERNEL_OK")
</pallas_src>

<mosaic_0001>
module attributes {stable_mosaic.version = 11 : i64} {
  func.func @critic_kernel(%arg0: i32, %arg1: memref<8x8xf32, #tpu.memory_space<vmem>>, %arg2: memref<8x4xf32, #tpu.memory_space<vmem>>, %arg3: memref<8x256xf32, #tpu.memory_space<vmem>>, %arg4: memref<4x256xf32, #tpu.memory_space<vmem>>, %arg5: memref<1x256xf32, #tpu.memory_space<vmem>>, %arg6: memref<256x256xf32, #tpu.memory_space<vmem>>, %arg7: memref<1x256xf32, #tpu.memory_space<vmem>>, %arg8: memref<1x256xf32, #tpu.memory_space<vmem>>, %arg9: memref<1xf32, #tpu.memory_space<smem>>, %arg10: memref<8x1xf32, #tpu.memory_space<vmem>>) attributes {dimension_semantics = [#tpu.dimension_semantics<parallel>], iteration_bounds = array<i64: 1>, scalar_prefetch = 0 : i64, scratch_operands = 0 : i64, tpu.core_type = #tpu.core_type<tc>, window_params = [{transform_indices = @transform_0, window_bounds = array<i64: 8, 8>}, {transform_indices = @transform_1, window_bounds = array<i64: 8, 4>}, {pipeline_mode = #tpu.pipeline_mode<synchronous>, transform_indices = @transform_2, window_bounds = array<i64: 8, 256>}, {pipeline_mode = #tpu.pipeline_mode<synchronous>, transform_indices = @transform_3, window_bounds = array<i64: 4, 256>}, {pipeline_mode = #tpu.pipeline_mode<synchronous>, transform_indices = @transform_4, window_bounds = array<i64: 1, 256>}, {pipeline_mode = #tpu.pipeline_mode<synchronous>, transform_indices = @transform_5, window_bounds = array<i64: 256, 256>}, {pipeline_mode = #tpu.pipeline_mode<synchronous>, transform_indices = @transform_6, window_bounds = array<i64: 1, 256>}, {pipeline_mode = #tpu.pipeline_mode<synchronous>, transform_indices = @transform_7, window_bounds = array<i64: 1, 256>}, {transform_indices = @transform_8, window_bounds = array<i64: 1>}, {transform_indices = @transform_9, window_bounds = array<i64: 8, 1>}]} {
    %c0 = arith.constant 0 : index
    %c0_0 = arith.constant 0 : index
    %0 = vector.load %arg1[%c0, %c0_0] : memref<8x8xf32, #tpu.memory_space<vmem>>, vector<8x8xf32>
    %c0_1 = arith.constant 0 : index
    %c0_2 = arith.constant 0 : index
    %1 = vector.load %arg3[%c0_1, %c0_2] : memref<8x256xf32, #tpu.memory_space<vmem>>, vector<8x256xf32>
    %cst = arith.constant dense<0.000000e+00> : vector<8x256xf32>
    %2 = tpu.matmul %0, %1, %cst {dimension_numbers = #tpu.dot_dimension_numbers<[1], [0], [0], [1], [0, 0, 1, 1], [], []>} : vector<8x8xf32>, vector<8x256xf32>, vector<8x256xf32> -> vector<8x256xf32>
    %c0_3 = arith.constant 0 : index
    %c0_4 = arith.constant 0 : index
    %3 = vector.load %arg2[%c0_3, %c0_4] : memref<8x4xf32, #tpu.memory_space<vmem>>, vector<8x4xf32>
    %c0_5 = arith.constant 0 : index
    %c0_6 = arith.constant 0 : index
    %4 = vector.load %arg4[%c0_5, %c0_6] : memref<4x256xf32, #tpu.memory_space<vmem>>, vector<4x256xf32>
    %cst_7 = arith.constant dense<0.000000e+00> : vector<8x256xf32>
    %5 = tpu.matmul %3, %4, %cst_7 {dimension_numbers = #tpu.dot_dimension_numbers<[1], [0], [0], [1], [0, 0, 1, 1], [], []>} : vector<8x4xf32>, vector<4x256xf32>, vector<8x256xf32> -> vector<8x256xf32>
    %6 = arith.addf %2, %5 : vector<8x256xf32>
    %c0_8 = arith.constant 0 : index
    %c0_9 = arith.constant 0 : index
    %7 = vector.load %arg5[%c0_8, %c0_9] : memref<1x256xf32, #tpu.memory_space<vmem>>, vector<1x256xf32>
    %8 = vector.broadcast %7 : vector<1x256xf32> to vector<8x256xf32>
    %9 = arith.addf %6, %8 : vector<8x256xf32>
    %cst_10 = arith.constant 0.000000e+00 : f32
    %10 = vector.broadcast %cst_10 : f32 to vector<8x256xf32>
    %11 = arith.maximumf %9, %10 : vector<8x256xf32>
    %c0_11 = arith.constant 0 : index
    %c0_12 = arith.constant 0 : index
    %12 = vector.load %arg6[%c0_11, %c0_12] : memref<256x256xf32, #tpu.memory_space<vmem>>, vector<256x256xf32>
    %cst_13 = arith.constant dense<0.000000e+00> : vector<8x256xf32>
    %13 = tpu.matmul %11, %12, %cst_13 {dimension_numbers = #tpu.dot_dimension_numbers<[1], [0], [0], [1], [0, 0, 1, 1], [], []>} : vector<8x256xf32>, vector<256x256xf32>, vector<8x256xf32> -> vector<8x256xf32>
    %c0_14 = arith.constant 0 : index
    %c0_15 = arith.constant 0 : index
    %14 = vector.load %arg7[%c0_14, %c0_15] : memref<1x256xf32, #tpu.memory_space<vmem>>, vector<1x256xf32>
    %15 = vector.broadcast %14 : vector<1x256xf32> to vector<8x256xf32>
    %16 = arith.addf %13, %15 : vector<8x256xf32>
    %cst_16 = arith.constant 0.000000e+00 : f32
    %17 = vector.broadcast %cst_16 : f32 to vector<8x256xf32>
    %18 = arith.maximumf %16, %17 : vector<8x256xf32>
    %c0_17 = arith.constant 0 : index
    %c0_18 = arith.constant 0 : index
    %19 = vector.load %arg8[%c0_17, %c0_18] : memref<1x256xf32, #tpu.memory_space<vmem>>, vector<1x256xf32>
    %20 = vector.broadcast %19 : vector<1x256xf32> to vector<8x256xf32>
    %21 = arith.mulf %18, %20 : vector<8x256xf32>
    %cst_19 = arith.constant dense<0.000000e+00> : vector<8xf32>
    %22 = vector.multi_reduction <add>, %21, %cst_19 [1] : vector<8x256xf32> to vector<8xf32>
    %23 = vector.shape_cast %22 : vector<8xf32> to vector<8x1xf32>
    %c0_20 = arith.constant 0 : index
    %24 = memref.load %arg9[%c0_20] : memref<1xf32, #tpu.memory_space<smem>>
    %25 = vector.broadcast %24 : f32 to vector<8x1xf32>
    %26 = arith.addf %23, %25 : vector<8x1xf32>
    %c0_21 = arith.constant 0 : index
    %c0_22 = arith.constant 0 : index
    %27 = vector.load %arg10[%c0_21, %c0_22] : memref<8x1xf32, #tpu.memory_space<vmem>>, vector<8x1xf32>
    tpu.vector_store %arg10[%c0_21, %c0_22], %26 {strides = array<i32>} : memref<8x1xf32, #tpu.memory_space<vmem>>, vector<8x1xf32>,
    return
  }
  func.func @transform_0(%arg0: i32) -> (i32, i32) {
    %c0_i32 = arith.constant 0 : i32
    %c0_i32_0 = arith.constant 0 : i32
    return %arg0, %c0_i32 : i32, i32
  }
  func.func @transform_1(%arg0: i32) -> (i32, i32) {
    %c0_i32 = arith.constant 0 : i32
    %c0_i32_0 = arith.constant 0 : i32
    return %arg0, %c0_i32 : i32, i32
  }
  func.func @transform_2(%arg0: i32) -> (i32, i32) {
    %c0_i32 = arith.constant 0 : i32
    %c0_i32_0 = arith.constant 0 : i32
    %c0_i32_1 = arith.constant 0 : i32
    return %c0_i32, %c0_i32_0 : i32, i32
  }
  func.func @transform_3(%arg0: i32) -> (i32, i32) {
    %c0_i32 = arith.constant 0 : i32
    %c0_i32_0 = arith.constant 0 : i32
    %c0_i32_1 = arith.constant 0 : i32
    return %c0_i32, %c0_i32_0 : i32, i32
  }
  func.func @transform_4(%arg0: i32) -> (i32, i32) {
    %c0_i32 = arith.constant 0 : i32
    %c0_i32_0 = arith.constant 0 : i32
    %c0_i32_1 = arith.constant 0 : i32
    return %c0_i32, %c0_i32_0 : i32, i32
  }
  func.func @transform_5(%arg0: i32) -> (i32, i32) {
    %c0_i32 = arith.constant 0 : i32
    %c0_i32_0 = arith.constant 0 : i32
    %c0_i32_1 = arith.constant 0 : i32
    return %c0_i32, %c0_i32_0 : i32, i32
  }
  func.func @transform_6(%arg0: i32) -> (i32, i32) {
    %c0_i32 = arith.constant 0 : i32
    %c0_i32_0 = arith.constant 0 : i32
    %c0_i32_1 = arith.constant 0 : i32
    return %c0_i32, %c0_i32_0 : i32, i32
  }
  func.func @transform_7(%arg0: i32) -> (i32, i32) {
    %c0_i32 = arith.constant 0 : i32
    %c0_i32_0 = arith.constant 0 : i32
    %c0_i32_1 = arith.constant 0 : i32
    return %c0_i32, %c0_i32_0 : i32, i32
  }
  func.func @transform_8(%arg0: i32) -> i32 {
    %c0_i32 = arith.constant 0 : i32
    %c0_i32_0 = arith.constant 0 : i32
    return %c0_i32 : i32
  }
  func.func @transform_9(%arg0: i32) -> (i32, i32) {
    %c0_i32 = arith.constant 0 : i32
    %c0_i32_0 = arith.constant 0 : i32
    return %arg0, %c0_i32 : i32, i32
  }
}

</mosaic_0001>

<bundles_post_ra>
// kernel: tpu_custom_call.1
= control target key start
LH: loop header
LB: loop body
LE: loop exit
PB: predicated region body
PF: predicated region fallthrough
CT: control target
= control target key end

     0   :  { %15 = vsyncpa [#allocation4], 0  ;;  %s534_s0 = inlined_call_operand.vmem [shape: f32[8,8], index: 0, kind: input, shape index: {}]   ;;  %s535_s1 = inlined_call_operand.vmem [shape: f32[8,4], index: 1, kind: input, shape index: {}]   ;;  %s536_s2 = inlined_call_operand.hbm [shape: f32[8,256], index: 2, kind: input, shape index: {}]   ;;  %s537_s3 = inlined_call_operand.vmem [shape: f32[4,256], index: 3, kind: input, shape index: {}]   ;;  %s538_s4 = inlined_call_operand.hbm [shape: f32[1,256], index: 4, kind: input, shape index: {}]   ;;  %s539_s5 = inlined_call_operand.hbm [shape: f32[256,256], index: 5, kind: input, shape index: {}]   ;;  %s540_s6 = inlined_call_operand.vmem [shape: f32[1,256], index: 6, kind: input, shape index: {}]   ;;  %s541_s7 = inlined_call_operand.vmem [shape: f32[1,256], index: 7, kind: input, shape index: {}]   ;;  %s542_s8 = inlined_call_operand.<no memory space> [shape: f32[1], index: 8, kind: input, shape index: {}]   ;;  %s543_s9 = inlined_call_operand.vmem [shape: f32[8,1], index: 9, kind: output, shape index: {}]  }
   0x1   :  { %16 = vsyncpa [#allocation6], 0  ;;  %s39_s11 = sshll.u32 %s538_s4, 4  ;;  %s449_s12 = smov [#allocation5]   ;;  %s40_s11 = int_to_ptr.hbm [resolvable:$true] %s39_s11 }
   0x2   :  { %s41_s13 = sshll.u32 %s449_s12, 4  ;;  %s26_s16 = sshll.u32 %s536_s2, 4  ;;  %s42_s13 = int_to_ptr.vmem [resolvable:$true] %s41_s13  ;;  %s27_s16 = int_to_ptr.hbm [resolvable:$true] %s26_s16 }
   0x3   :  { %44 = dma.hbm_to_vmem [thread:$0]  %s40_s11, 32, %s42_s13, [#allocation6]  }
   0x4   :  { %s450_s17 = smov [#allocation3]   ;;  %s49_s21 = sshll.u32 %s539_s5, 4  ;;  %s50_s21 = int_to_ptr.hbm [resolvable:$true] %s49_s21 }
   0x5   :  { %s28_s18 = sshll.u32 %s450_s17, 4  ;;  %s451_s4 = smov [#allocation7]   ;;  %s29_s18 = int_to_ptr.vmem [resolvable:$true] %s28_s18 }
   0x6   :  { %31 = dma.hbm_to_vmem [thread:$0]  %s27_s16, 256, %s29_s18, [#allocation4]  }
   0x7   :  { %s51_s22 = sshll.u32 %s451_s4, 4  ;;  %s452_s23 = smov 256   ;;  %s52_s22 = int_to_ptr.vmem [resolvable:$true] %s51_s22 }
   0x8   :  { %s453_s24 = smov 16  }
   0x9   :  { %57 = dma.hbm_to_vmem [thread:$0]  %s50_s21, 8192, %s52_s22, [#allocation6], %s452_s23, %s452_s23, %s453_s24  }
   0xa   :  { %445 = dma.done.wait [#allocation4], 256  }
   0xb   :  { %446 = vsyncadd [#allocation4], 4294967040 }
   0xc   :  { %447 = dma.done.wait [#allocation6], 8224  }
   0xd   :  { %448 = vsyncadd [#allocation6], 4294959072  ;;  %vm134_vm0 = vcmask 64512   ;;  %v77_v0 = vld [vmem:[#allocation3] sm:$0xff]  ;;  %v76_v1 = vld [vmem:[%s534_s0] sm:$0xff]  ;;  %vm89_vm1 = vcmask 1043456  }
   0xe   :  { %v78_v2 = vld [vmem:[#allocation3 + $0x8] sm:$0xff]  ;;  %153 = vmatpush.msra.mxu2 %v77_v0  ;;  %v80_v3 = vld [vmem:[%s537_s3] sm:$0xff]  ;;  %vm85_vm2 = vcmask 31744   ;;  %vm354_vm3 = vcmask 7168  }
   0xf   :  { %173 = vmatpush.msra.mxu3 %v78_v2  ;;  %366 = vmatmul.msk.f32.vlgmr.msra.gmra.mxu2 %vm134_vm0, %v76_v1  ;;  %82 = vst [vmem:[#allocation1] ss:$2 sm:$0xff] %v80_v3  ;;  %v219_v4 = vld [vmem:[#allocation7 + $0xf8] sm:$0xff]  ;;  %v217_v5 = vld [vmem:[#allocation7 + $0xe8] sm:$0xff]  ;;  %v218_v12 = vld [vmem:[#allocation7 + $0xf0] sm:$0xff] }
  0x10   :  { %367 = vmatmul.msk.f32.vlgmr.msra.gmra.mxu3 %vm134_vm0, %v76_v1  ;;  %298 = vmatpush.msrb.mxu2 %v219_v4  ;;  %v251_v6 = vld [vmem:[#allocation7 + $0x1f8] sm:$0xff]  ;;  %v249_v8 = vld [vmem:[#allocation7 + $0x1e8] sm:$0xff]  ;;  %v250_v13 = vld [vmem:[#allocation7 + $0x1f0] sm:$0xff] }
  0x11   :  { %318 = vmatpush.msrb.mxu3 %v251_v6  ;;  %v215_v7 = vld [vmem:[#allocation7 + $0xd8] sm:$0xff]  ;;  %v213_v9 = vld [vmem:[#allocation7 + $0xc8] sm:$0xff]  ;;  %v216_v18 = vld [vmem:[#allocation7 + $0xe0] sm:$0xff] }
  0x12   :  { %299 = vmatpush.msrb.mxu2 %v217_v5  ;;  %v247_v10 = vld [vmem:[#allocation7 + $0x1d8] sm:$0xff]  ;;  %v79_v11 = vld [vmem:[%s535_s1] sm:$0xff]  ;;  %v214_v22 = vld [vmem:[#allocation7 + $0xd0] sm:$0xff] }
  0x13   :  { %319 = vmatpush.msrb.mxu3 %v249_v8  ;;  %v211_v16 = vld [vmem:[#allocation7 + $0xb8] sm:$0xff]  ;;  %v245_v17 = vld [vmem:[#allocation7 + $0x1c8] sm:$0xff]  ;;  %v248_v19 = vld [vmem:[#allocation7 + $0x1e0] sm:$0xff] }
  0x14   :  { %300 = vmatpush.msrb.mxu2 %v215_v7  ;;  %v209_v20 = vld [vmem:[#allocation7 + $0xa8] sm:$0xff]  ;;  %v243_v21 = vld [vmem:[#allocation7 + $0x1b8] sm:$0xff]  ;;  %v246_v23 = vld [vmem:[#allocation7 + $0x1d0] sm:$0xff] }
  0x15   :  { %320 = vmatpush.msrb.mxu3 %v247_v10  ;;  %v207_v24 = vld [vmem:[#allocation7 + $0x98] sm:$0xff]  ;;  %v241_v25 = vld [vmem:[#allocation7 + $0x1a8] sm:$0xff]  ;;  %v212_v26 = vld [vmem:[#allocation7 + $0xc0] sm:$0xff] }
  0x16   :  { %v83_v14 = vld.sshfl [vmem:[#allocation1] sm:$0xff pattern:$0x75316420]  ;;  %v84_v15 = vld.sshfl [vmem:[#allocation1 + $0x8] sm:$0xff pattern:$0x75316420]  ;;  %301 = vmatpush.msrb.mxu2 %v213_v9 }
  0x17   :  { %362 = vmatpush.msk.msra.mxu0 %vm89_vm1, %v83_v14  ;;  %364 = vmatpush.msk.msra.mxu1 %vm89_vm1, %v84_v15  ;;  %v244_v27 = vld [vmem:[#allocation7 + $0x1c0] sm:$0xff]  ;;  %v205_v28 = vld [vmem:[#allocation7 + $0x88] sm:$0xff]  ;;  %v239_v29 = vld [vmem:[#allocation7 + $0x198] sm:$0xff] }
  0x18   :  { %363 = vmatmul.msk.f32.vlgmr.msra.gmra.mxu0 %vm85_vm2, %v79_v11  ;;  %365 = vmatmul.msk.f32.vlgmr.msra.gmra.mxu1 %vm85_vm2, %v79_v11  ;;  %v210_v30 = vld [vmem:[#allocation7 + $0xb0] sm:$0xff]  ;;  %v203_v32 = vld [vmem:[#allocation7 + $0x78] sm:$0xff]  ;;  %v237_v33 = vld [vmem:[#allocation7 + $0x188] sm:$0xff] }
  0x19   :  { %258 = vmatpush.msrb.mxu0 %v218_v12  ;;  %278 = vmatpush.msrb.mxu1 %v250_v13  ;;  %v242_v31 = vld [vmem:[#allocation7 + $0x1b0] sm:$0xff]  ;;  %v208_v34 = vld [vmem:[#allocation7 + $0xa0] sm:$0xff]  ;;  %v201_v36 = vld [vmem:[#allocation7 + $0x68] sm:$0xff] }
  0x1a   :  { %302 = vmatpush.msrb.mxu2 %v211_v16  ;;  %321 = vmatpush.msrb.mxu3 %v245_v17  ;;  %v240_v35 = vld [vmem:[#allocation7 + $0x1a0] sm:$0xff]  ;;  %v235_v37 = vld [vmem:[#allocation7 + $0x178] sm:$0xff]  ;;  %v206_v38 = vld [vmem:[#allocation7 + $0x90] sm:$0xff] }
  0x1b   :  { %259 = vmatpush.msrb.mxu0 %v216_v18  ;;  %279 = vmatpush.msrb.mxu1 %v248_v19  ;;  %v238_v39 = vld [vmem:[#allocation7 + $0x190] sm:$0xff]  ;;  %v199_v40 = vld [vmem:[#allocation7 + $0x58] sm:$0xff]  ;;  %v233_v41 = vld [vmem:[#allocation7 + $0x168] sm:$0xff] }
  0x1c   :  { %303 = vmatpush.msrb.mxu2 %v209_v20  ;;  %322 = vmatpush.msrb.mxu3 %v243_v21  ;;  %v204_v42 = vld [vmem:[#allocation7 + $0x80] sm:$0xff]  ;;  %v197_v44 = vld [vmem:[#allocation7 + $0x48] sm:$0xff]  ;;  %v231_v45 = vld [vmem:[#allocation7 + $0x158] sm:$0xff] }
  0x1d   :  { %260 = vmatpush.msrb.mxu0 %v214_v22  ;;  %280 = vmatpush.msrb.mxu1 %v246_v23  ;;  %v236_v43 = vld [vmem:[#allocation7 + $0x180] sm:$0xff]  ;;  %v202_v46 = vld [vmem:[#allocation7 + $0x70] sm:$0xff]  ;;  %v195_v55 = vld [vmem:[#allocation7 + $0x38] sm:$0xff] }
  0x1e   :  { %304 = vmatpush.msrb.mxu2 %v207_v24  ;;  %323 = vmatpush.msrb.mxu3 %v241_v25  ;;  %v234_v47 = vld [vmem:[#allocation7 + $0x170] sm:$0xff]  ;;  %v200_v48 = vld [vmem:[#allocation7 + $0x60] sm:$0xff]  ;;  %v229_v56 = vld [vmem:[#allocation7 + $0x148] sm:$0xff] }
  0x1f   :  { %261 = vmatpush.msrb.mxu0 %v212_v26  ;;  %281 = vmatpush.msrb.mxu1 %v244_v27  ;;  %v232_v49 = vld [vmem:[#allocation7 + $0x160] sm:$0xff]  ;;  %v198_v50 = vld [vmem:[#allocation7 + $0x50] sm:$0xff]  ;;  %v193_v59 = vld [vmem:[#allocation7 + $0x28] sm:$0xff] }
  0x20   :  { %305 = vmatpush.msrb.mxu2 %v205_v28  ;;  %324 = vmatpush.msrb.mxu3 %v239_v29  ;;  %v230_v51 = vld [vmem:[#allocation7 + $0x150] sm:$0xff]  ;;  %v196_v52 = vld [vmem:[#allocation7 + $0x40] sm:$0xff]  ;;  %v227_v60 = vld [vmem:[#allocation7 + $0x138] sm:$0xff] }
  0x21   :  { %262 = vmatpush.msrb.mxu0 %v210_v30  ;;  %282 = vmatpush.msrb.mxu1 %v242_v31  ;;  %v194_v53 = vld [vmem:[#allocation7 + $0x30] sm:$0xff]  ;;  %v228_v54 = vld [vmem:[#allocation7 + $0x140] sm:$0xff]  ;;  %v191_v63 = vld [vmem:[#allocation7 + $0x18] sm:$0xff] }
  0x22   :  { %306 = vmatpush.msrb.mxu2 %v203_v32  ;;  %325 = vmatpush.msrb.mxu3 %v237_v33  ;;  %v192_v57 = vld [vmem:[#allocation7 + $0x20] sm:$0xff]  ;;  %v226_v58 = vld [vmem:[#allocation7 + $0x130] sm:$0xff]  ;;  %v225_v0 = vld [vmem:[#allocation7 + $0x128] sm:$0xff] }
  0x23   :  { %263 = vmatpush.msrb.mxu0 %v208_v34  ;;  %283 = vmatpush.msrb.mxu1 %v240_v35  ;;  %v190_v61 = vld [vmem:[#allocation7 + $0x10] sm:$0xff]  ;;  %v224_v62 = vld [vmem:[#allocation7 + $0x120] sm:$0xff]  ;;  %v189_v3 = vld [vmem:[#allocation7 + $0x8] sm:$0xff] }
  0x24   :  { %307 = vmatpush.msrb.mxu2 %v201_v36  ;;  %326 = vmatpush.msrb.mxu3 %v235_v37  ;;  %v188_v1 = vld [vmem:[#allocation7] sm:$0xff]  ;;  %v222_v2 = vld [vmem:[#allocation7 + $0x110] sm:$0xff]  ;;  %v223_v4 = vld [vmem:[#allocation7 + $0x118] sm:$0xff] }
  0x25   :  { %264 = vmatpush.msrb.mxu0 %v206_v38  ;;  %284 = vmatpush.msrb.mxu1 %v238_v39  ;;  %v220_v5 = vld [vmem:[#allocation7 + $0x100] sm:$0xff]  ;;  %v221_v6 = vld [vmem:[#allocation7 + $0x108] sm:$0xff]  ;;  %v178_v7 = vld [vmem:[#allocation5] sm:$0x3]  ;;  %v352_v39 = vstv %s542_s8 }
  0x26   :  { %308 = vmatpush.msrb.mxu2 %v199_v40  ;;  %327 = vmatpush.msrb.mxu3 %v233_v41  ;;  %v180_v10 = vperm.slane %v178_v7, 0  ;;  %v181_v11 = vperm.slane %v178_v7, 1  ;;  %v252_v20 = vld [vmem:[%s540_s6] sm:$0x3] }
  0x27   :  { %265 = vmatpush.msrb.mxu0 %v204_v42  ;;  %285 = vmatpush.msrb.mxu1 %v236_v43  ;;  %v254_v21 = vperm.slane %v252_v20, 0  ;;  %v255_v25 = vperm.slane %v252_v20, 1  ;;  %v340_v28 = vld [vmem:[%s541_s7] sm:$0x3] }
  0x28   :  { %309 = vmatpush.msrb.mxu2 %v197_v44  ;;  %328 = vmatpush.msrb.mxu3 %v231_v45  ;;  %v342_v33 = vperm.slane %v340_v28, 0  ;;  %v343_v34 = vperm.slane %v340_v28, 1 }
  0x29   :  { %266 = vmatpush.msrb.mxu0 %v202_v46  ;;  %286 = vmatpush.msrb.mxu1 %v234_v47 }
  0x2a   :  { %310 = vmatpush.msrb.mxu2 %v195_v55  ;;  %329 = vmatpush.msrb.mxu3 %v229_v56 }
  0x2b   :  { %267 = vmatpush.msrb.mxu0 %v200_v48  ;;  %287 = vmatpush.msrb.mxu1 %v232_v49 }
  0x2c   :  { %311 = vmatpush.msrb.mxu2 %v193_v59  ;;  %330 = vmatpush.msrb.mxu3 %v227_v60 }
  0x2d   :  { %268 = vmatpush.msrb.mxu0 %v198_v50  ;;  %288 = vmatpush.msrb.mxu1 %v230_v51 }
  0x2e   :  { %312 = vmatpush.msrb.mxu2 %v191_v63  ;;  %331 = vmatpush.msrb.mxu3 %v225_v0 }
  0x2f   :  { %269 = vmatpush.msrb.mxu0 %v196_v52  ;;  %289 = vmatpush.msrb.mxu1 %v228_v54 }
  0x30   :  { %313 = vmatpush.msrb.mxu2 %v189_v3  ;;  %332 = vmatpush.msrb.mxu3 %v223_v4 }
  0x31   :  { %270 = vmatpush.msrb.mxu0 %v194_v53  ;;  %290 = vmatpush.msrb.mxu1 %v226_v58 }
  0x32   :  { %333 = vmatpush.msrb.mxu3 %v221_v6 }
  0x33   :  { %271 = vmatpush.msrb.mxu0 %v192_v57  ;;  %291 = vmatpush.msrb.mxu1 %v224_v62 }
  0x35   :  { %272 = vmatpush.msrb.mxu0 %v190_v61  ;;  %292 = vmatpush.msrb.mxu1 %v222_v2 }
  0x37   :  { %273 = vmatpush.msrb.mxu0 %v188_v1  ;;  %293 = vmatpush.msrb.mxu1 %v220_v5 }
  0x92   :  { %v155_v8 = vpop.f32.mrf.mxu2 }
  0x93   :  { %v175_v9 = vpop.f32.mrf.mxu3 }
  0x95   :  { %v111_v12 = vpop.f32.mrf.mxu0  ;;  %v131_v13 = vpop.f32.mrf.mxu1 }
  0x96   :  { %v156_v14 = vadd.f32 %v155_v8, %v111_v12  ;;  %v176_v15 = vadd.f32 %v175_v9, %v131_v13 }
  0x98   :  { %v184_v16 = vadd.f32 %v180_v10, %v156_v14  ;;  %v185_v17 = vadd.f32 %v181_v11, %v176_v15 }
  0x9a   :  { %v186_v18 = vmax.f32 %v184_v16, 0.0  ;;  %v187_v19 = vmax.f32 %v185_v17, 0.0 }
  0x9c   :  { %274 = vmatmul.f32.vlgmr.msrb.gmra.mxu0 %v186_v18  ;;  %314 = vmatmul.f32.vlgmr.msrb.gmra.mxu2 %v186_v18 }
  0x9d   :  { %294 = vmatmul.f32.vlgmr.msrb.gmra.mxu1 %v187_v19  ;;  %334 = vmatmul.f32.vlgmr.msrb.gmra.mxu3 %v187_v19 }
 0x119   :  { %v275_v22 = vpop.f32.mrf.mxu0 }
 0x11a   :  { %v276_v23 = vadd.f32 %v275_v22, %v254_v21  ;;  %v295_v24 = vpop.f32.mrf.mxu1 }
 0x11c   :  { %v296_v26 = vadd.f32 %v295_v24, %v276_v23 }
 0x11e   :  { %v338_v31 = vmax.f32 %v296_v26, 0.0 }
 0x11f   :  { %v315_v27 = vpop.f32.mrf.mxu2 }
 0x120   :  { %v316_v29 = vadd.f32 %v315_v27, %v255_v25  ;;  %v335_v30 = vpop.f32.mrf.mxu3  ;;  %v346_v36 = vmul.f32 %v342_v33, %v338_v31 }
 0x122   :  { %v336_v32 = vadd.f32 %v335_v30, %v316_v29 }
 0x124   :  { %v339_v35 = vmax.f32 %v336_v32, 0.0 }
 0x126   :  { %v347_v37 = vmul.f32 %v343_v34, %v339_v35 }
 0x128   :  { %v348_v38 = vadd.f32 %v347_v37, %v346_v36 }
 0x12a   :  { %349 = vadd.xlane.f32.xlu0 %v348_v38 }
 0x19d   :  { %v350_v40 = vpop.xlane.xlu0 %349 }
 0x19e   :  { %v353_v41 = vadd.f32 %v352_v39, %v350_v40 }
 0x1a0   :  { %355 = vst.msk [vmem:[%s543_s9] sm:$0xff] %vm354_vm3, %v353_v41 }
 0x1a1   :  { %360 = vsyncpa [#allocation4], 1 }
 0x1a2   :  { %361 = vsyncpa [#allocation6], 1 }

</bundles_post_ra>
